<compile_context>
chip_gen: v7x
topology: tpu7x:2x2x1
jax: 0.10.0
libtpu: 0.0.40
codegen_flags: <defaults>
</compile_context>

<pallas_src>
import functools

import jax
import jax.numpy as jnp
from jax import lax
from jax.experimental import pallas as pl
from jax.experimental.pallas import tpu as pltpu


def mha_kernel(q_in_ref, k_in_ref,
               wq_ref, bq_ref, wk_ref, bk_ref, wv_ref, bv_ref,
               kmask_ref, qmask_ref,
               o_ref, *, num_heads, causality):
    # Raw per-batch inputs (native dtype into the MXU, f32 accumulation).
    x_q = q_in_ref[0]                              # (Tq, C)
    x_k = k_in_ref[0]                              # (Tk, C)

    # QKV projections: Linear == row matmul + bias (weights stored as (in, out)).
    q = jnp.dot(x_q, wq_ref[...], preferred_element_type=jnp.float32) + bq_ref[...]
    k = jnp.dot(x_k, wk_ref[...], preferred_element_type=jnp.float32) + bk_ref[...]
    v = jnp.dot(x_k, wv_ref[...], preferred_element_type=jnp.float32) + bv_ref[...]

    t_q, c = q.shape
    t_k = k.shape[0]
    d = c // num_heads
    scale = float(d) ** -0.5
    neg = jnp.float32(-(2.0 ** 32) + 1.0)          # same padding constant as torch

    kmask = kmask_ref[0]                           # (1, Tk)  0/1 key-padding mask
    qmask = qmask_ref[0]                           # (Tq, 1)  0/1 query-padding mask

    if causality:
        row = lax.broadcasted_iota(jnp.int32, (t_q, t_k), 0)
        col = lax.broadcasted_iota(jnp.int32, (t_q, t_k), 1)
        causal_keep = row >= col                   # tril(ones)

    head_outs = []
    for h in range(num_heads):                     # static unroll over heads
        qh = q[:, h * d:(h + 1) * d]               # (Tq, d)
        kh = k[:, h * d:(h + 1) * d]               # (Tk, d)
        vh = v[:, h * d:(h + 1) * d]               # (Tk, d)
        # scores = qh @ kh^T — contract the head dim directly (no transpose copy).
        s = lax.dot_general(qh, kh, (((1,), (1,)), ((), ())),
                            preferred_element_type=jnp.float32) * scale
        s = jnp.where(kmask == 0.0, neg, s)        # key padding mask
        if causality:
            s = jnp.where(causal_keep, s, neg)     # causal mask
        m = jnp.max(s, axis=-1, keepdims=True)
        e = jnp.exp(s - m)
        p = e / jnp.sum(e, axis=-1, keepdims=True) # softmax
        p = p * qmask                              # query padding mask
        # TODO(synk): training-mode dropout on p would go here (identity in eval).
        head_outs.append(jnp.dot(p, vh, preferred_element_type=jnp.float32))

    out = jnp.concatenate(head_outs, axis=-1)      # merge heads -> (Tq, C)
    out = out + x_q.astype(jnp.float32)            # residual connection
    o_ref[0] = out.astype(o_ref.dtype)             # single lane-dense store


def multihead_attention(queries, keys, wq, bq, wk, bk, wv, bv, *,
                        num_heads=8, causality=False):
    """queries: (N, Tq, C), keys: (N, Tk, C). w*: (C, C) stored (in, out), b*: (C,)."""
    n, t_q, c = queries.shape
    nk, t_k, ck = keys.shape
    assert nk == n and ck == c and c % num_heads == 0

    # Padding masks from the raw inputs (cheap XLA reductions, done once).
    key_mask = jnp.sign(jnp.abs(jnp.sum(keys, axis=-1)))[:, None, :]       # (N,1,Tk)
    query_mask = jnp.sign(jnp.abs(jnp.sum(queries, axis=-1)))[:, :, None]  # (N,Tq,1)

    bq2 = bq.reshape(1, c).astype(jnp.float32)
    bk2 = bk.reshape(1, c).astype(jnp.float32)
    bv2 = bv.reshape(1, c).astype(jnp.float32)

    kernel = functools.partial(mha_kernel, num_heads=num_heads, causality=causality)

    return pl.pallas_call(
        kernel,
        out_shape=jax.ShapeDtypeStruct((n, t_q, c), queries.dtype),
        grid_spec=pltpu.PrefetchScalarGridSpec(
            num_scalar_prefetch=0,
            grid=(n,),                                             # one step per batch
            in_specs=[
                pl.BlockSpec((1, t_q, c), lambda i: (i, 0, 0)),    # queries
                pl.BlockSpec((1, t_k, c), lambda i: (i, 0, 0)),    # keys
                pl.BlockSpec((c, c), lambda i: (0, 0)),            # Wq (VMEM-resident)
                pl.BlockSpec((1, c), lambda i: (0, 0)),            # bq
                pl.BlockSpec((c, c), lambda i: (0, 0)),            # Wk
                pl.BlockSpec((1, c), lambda i: (0, 0)),            # bk
                pl.BlockSpec((c, c), lambda i: (0, 0)),            # Wv
                pl.BlockSpec((1, c), lambda i: (0, 0)),            # bv
                pl.BlockSpec((1, 1, t_k), lambda i: (i, 0, 0)),    # key padding mask
                pl.BlockSpec((1, t_q, 1), lambda i: (i, 0, 0)),    # query padding mask
            ],
            out_specs=pl.BlockSpec((1, t_q, c), lambda i: (i, 0, 0)),
        ),
        compiler_params=pltpu.CompilerParams(
            dimension_semantics=("parallel",),                     # megacore/2-TC shardable
            vmem_limit_bytes=48 * 1024 * 1024,                     # headroom incl. v7x 64 MiB
        ),
    )(queries, keys, wq, bq2, wk, bk2, wv, bv2, key_mask, query_mask)


def reference(queries, keys, wq, bq, wk, bk, wv, bv, *, num_heads, causality):
    """Pure-JAX reference mirroring the PyTorch forward (eval mode, K_ fix)."""
    hp = lax.Precision.HIGHEST
    q = jnp.einsum("ntc,cd->ntd", queries, wq, precision=hp) + bq
    k = jnp.einsum("ntc,cd->ntd", keys, wk, precision=hp) + bk
    v = jnp.einsum("ntc,cd->ntd", keys, wv, precision=hp) + bv
    n, t_q, c = queries.shape
    t_k = keys.shape[1]
    d = c // num_heads
    qh = jnp.concatenate(jnp.split(q, num_heads, axis=2), axis=0)     # (hN,Tq,d)
    kh = jnp.concatenate(jnp.split(k, num_heads, axis=2), axis=0)
    vh = jnp.concatenate(jnp.split(v, num_heads, axis=2), axis=0)
    s = jnp.einsum("bqd,bkd->bqk", qh, kh, precision=hp) / (d ** 0.5)
    neg = -(2.0 ** 32) + 1.0
    kmask = jnp.sign(jnp.abs(jnp.sum(keys, -1)))                      # (N, Tk)
    kmask = jnp.tile(kmask, (num_heads, 1))[:, None, :]               # (hN,1,Tk)
    s = jnp.where(kmask == 0, neg, s)
    if causality:
        tril = jnp.tril(jnp.ones((t_q, t_k), s.dtype))
        s = jnp.where(tril[None, :, :] == 0, neg, s)
    p = jax.nn.softmax(s, axis=-1)
    qmask = jnp.sign(jnp.abs(jnp.sum(queries, -1)))                   # (N, Tq)
    qmask = jnp.tile(qmask, (num_heads, 1))[:, :, None]               # (hN,Tq,1)
    p = p * qmask
    out = jnp.einsum("bqk,bkd->bqd", p, vh, precision=hp)             # (hN,Tq,d)
    out = jnp.concatenate(jnp.split(out, num_heads, axis=0), axis=2)  # (N,Tq,C)
    return out + queries


if __name__ == "__main__":
    # Small shapes consistent with the module: batch=2, seq=8, hidden=32, 4 heads.
    N, T, C, H = 2, 8, 32, 4
    key = jax.random.PRNGKey(0)
    kx, k1, k2, k3, k4, k5, k6 = jax.random.split(key, 7)

    x = jax.random.normal(kx, (N, T, C), dtype=jnp.float32)   # self-attention: queries == keys

    # Deterministic Linear(C, C) params; weights stored pre-transposed as (in, out).
    bound = 1.0 / (C ** 0.5)
    wq = jax.random.uniform(k1, (C, C), jnp.float32, -bound, bound)
    bq = jax.random.uniform(k2, (C,), jnp.float32, -bound, bound)
    wk = jax.random.uniform(k3, (C, C), jnp.float32, -bound, bound)
    bk = jax.random.uniform(k4, (C,), jnp.float32, -bound, bound)
    wv = jax.random.uniform(k5, (C, C), jnp.float32, -bound, bound)
    bv = jax.random.uniform(k6, (C,), jnp.float32, -bound, bound)

    out = multihead_attention(x, x, wq, bq, wk, bk, wv, bv,
                              num_heads=H, causality=True)
    out = jax.block_until_ready(out)

    ref = reference(x, x, wq, bq, wk, bk, wv, bv, num_heads=H, causality=True)
    assert out.shape == (N, T, C)
    assert jnp.allclose(out, ref, atol=1e-4, rtol=1e-4), "mismatch vs reference"

    print("KERNEL_OK")
</pallas_src>

<mosaic_0001>
module attributes {stable_mosaic.version = 11 : i64} {
  func.func @mha_kernel(%arg0: i32, %arg1: memref<1x8x32xf32, #tpu.memory_space<vmem>>, %arg2: memref<1x8x32xf32, #tpu.memory_space<vmem>>, %arg3: memref<32x32xf32, #tpu.memory_space<vmem>>, %arg4: memref<1x32xf32, #tpu.memory_space<vmem>>, %arg5: memref<32x32xf32, #tpu.memory_space<vmem>>, %arg6: memref<1x32xf32, #tpu.memory_space<vmem>>, %arg7: memref<32x32xf32, #tpu.memory_space<vmem>>, %arg8: memref<1x32xf32, #tpu.memory_space<vmem>>, %arg9: memref<1x1x8xf32, #tpu.memory_space<vmem>>, %arg10: memref<1x8x1xf32, #tpu.memory_space<vmem>>, %arg11: memref<1x8x32xf32, #tpu.memory_space<vmem>>) attributes {dimension_semantics = [#tpu.dimension_semantics<parallel>], iteration_bounds = array<i64: 2>, scalar_prefetch = 0 : i64, scratch_operands = 0 : i64, tpu.core_type = #tpu.core_type<tc>, window_params = [{transform_indices = @transform_0, window_bounds = array<i64: 1, 8, 32>}, {transform_indices = @transform_1, window_bounds = array<i64: 1, 8, 32>}, {pipeline_mode = #tpu.pipeline_mode<synchronous>, transform_indices = @transform_2, window_bounds = array<i64: 32, 32>}, {pipeline_mode = #tpu.pipeline_mode<synchronous>, transform_indices = @transform_3, window_bounds = array<i64: 1, 32>}, {pipeline_mode = #tpu.pipeline_mode<synchronous>, transform_indices = @transform_4, window_bounds = array<i64: 32, 32>}, {pipeline_mode = #tpu.pipeline_mode<synchronous>, transform_indices = @transform_5, window_bounds = array<i64: 1, 32>}, {pipeline_mode = #tpu.pipeline_mode<synchronous>, transform_indices = @transform_6, window_bounds = array<i64: 32, 32>}, {pipeline_mode = #tpu.pipeline_mode<synchronous>, transform_indices = @transform_7, window_bounds = array<i64: 1, 32>}, {transform_indices = @transform_8, window_bounds = array<i64: 1, 1, 8>}, {transform_indices = @transform_9, window_bounds = array<i64: 1, 8, 1>}, {transform_indices = @transform_10, window_bounds = array<i64: 1, 8, 32>}]} {
    %c0 = arith.constant 0 : index
    %c0_0 = arith.constant 0 : index
    %c0_1 = arith.constant 0 : index
    %0 = vector.load %arg1[%c0, %c0_0, %c0_1] : memref<1x8x32xf32, #tpu.memory_space<vmem>>, vector<1x8x32xf32>
    %1 = vector.shape_cast %0 : vector<1x8x32xf32> to vector<8x32xf32>
    %c0_2 = arith.constant 0 : index
    %c0_3 = arith.constant 0 : index
    %c0_4 = arith.constant 0 : index
    %2 = vector.load %arg2[%c0_2, %c0_3, %c0_4] : memref<1x8x32xf32, #tpu.memory_space<vmem>>, vector<1x8x32xf32>
    %3 = vector.shape_cast %2 : vector<1x8x32xf32> to vector<8x32xf32>
    %c0_5 = arith.constant 0 : index
    %c0_6 = arith.constant 0 : index
    %4 = vector.load %arg3[%c0_5, %c0_6] : memref<32x32xf32, #tpu.memory_space<vmem>>, vector<32x32xf32>
    %cst = arith.constant dense<0.000000e+00> : vector<8x32xf32>
    %5 = tpu.matmul %1, %4, %cst {dimension_numbers = #tpu.dot_dimension_numbers<[1], [0], [0], [1], [0, 0, 1, 1], [], []>} : vector<8x32xf32>, vector<32x32xf32>, vector<8x32xf32> -> vector<8x32xf32>
    %c0_7 = arith.constant 0 : index
    %c0_8 = arith.constant 0 : index
    %6 = vector.load %arg4[%c0_7, %c0_8] : memref<1x32xf32, #tpu.memory_space<vmem>>, vector<1x32xf32>
    %7 = vector.broadcast %6 : vector<1x32xf32> to vector<8x32xf32>
    %8 = arith.addf %5, %7 : vector<8x32xf32>
    %c0_9 = arith.constant 0 : index
    %c0_10 = arith.constant 0 : index
    %9 = vector.load %arg5[%c0_9, %c0_10] : memref<32x32xf32, #tpu.memory_space<vmem>>, vector<32x32xf32>
    %cst_11 = arith.constant dense<0.000000e+00> : vector<8x32xf32>
    %10 = tpu.matmul %3, %9, %cst_11 {dimension_numbers = #tpu.dot_dimension_numbers<[1], [0], [0], [1], [0, 0, 1, 1], [], []>} : vector<8x32xf32>, vector<32x32xf32>, vector<8x32xf32> -> vector<8x32xf32>
    %c0_12 = arith.constant 0 : index
    %c0_13 = arith.constant 0 : index
    %11 = vector.load %arg6[%c0_12, %c0_13] : memref<1x32xf32, #tpu.memory_space<vmem>>, vector<1x32xf32>
    %12 = vector.broadcast %11 : vector<1x32xf32> to vector<8x32xf32>
    %13 = arith.addf %10, %12 : vector<8x32xf32>
    %c0_14 = arith.constant 0 : index
    %c0_15 = arith.constant 0 : index
    %14 = vector.load %arg7[%c0_14, %c0_15] : memref<32x32xf32, #tpu.memory_space<vmem>>, vector<32x32xf32>
    %cst_16 = arith.constant dense<0.000000e+00> : vector<8x32xf32>
    %15 = tpu.matmul %3, %14, %cst_16 {dimension_numbers = #tpu.dot_dimension_numbers<[1], [0], [0], [1], [0, 0, 1, 1], [], []>} : vector<8x32xf32>, vector<32x32xf32>, vector<8x32xf32> -> vector<8x32xf32>
    %c0_17 = arith.constant 0 : index
    %c0_18 = arith.constant 0 : index
    %16 = vector.load %arg8[%c0_17, %c0_18] : memref<1x32xf32, #tpu.memory_space<vmem>>, vector<1x32xf32>
    %17 = vector.broadcast %16 : vector<1x32xf32> to vector<8x32xf32>
    %18 = arith.addf %15, %17 : vector<8x32xf32>
    %c0_19 = arith.constant 0 : index
    %c0_20 = arith.constant 0 : index
    %c0_21 = arith.constant 0 : index
    %19 = vector.load %arg9[%c0_19, %c0_20, %c0_21] : memref<1x1x8xf32, #tpu.memory_space<vmem>>, vector<1x1x8xf32>
    %20 = vector.shape_cast %19 : vector<1x1x8xf32> to vector<1x8xf32>
    %c0_22 = arith.constant 0 : index
    %c0_23 = arith.constant 0 : index
    %c0_24 = arith.constant 0 : index
    %21 = vector.load %arg10[%c0_22, %c0_23, %c0_24] : memref<1x8x1xf32, #tpu.memory_space<vmem>>, vector<1x8x1xf32>
    %22 = vector.shape_cast %21 : vector<1x8x1xf32> to vector<8x1xf32>
    %23 = tpu.iota {dimensions = array<i32: 0>} : vector<8x8xi32>
    %24 = tpu.iota {dimensions = array<i32: 1>} : vector<8x8xi32>
    %25 = arith.cmpi sge, %23, %24 : vector<8x8xi32>
    %26 = vector.extract_strided_slice %8 {offsets = [0, 0], sizes = [8, 8], strides = [1, 1]} : vector<8x32xf32> to vector<8x8xf32>
    %27 = vector.extract_strided_slice %13 {offsets = [0, 0], sizes = [8, 8], strides = [1, 1]} : vector<8x32xf32> to vector<8x8xf32>
    %28 = vector.extract_strided_slice %18 {offsets = [0, 0], sizes = [8, 8], strides = [1, 1]} : vector<8x32xf32> to vector<8x8xf32>
    %cst_25 = arith.constant dense<0.000000e+00> : vector<8x8xf32>
    %29 = tpu.matmul %26, %27, %cst_25 {dimension_numbers = #tpu.dot_dimension_numbers<[1], [1], [0], [0], [0, 0, 1, 0], [], []>} : vector<8x8xf32>, vector<8x8xf32>, vector<8x8xf32> -> vector<8x8xf32>
    %cst_26 = arith.constant 0.353553385 : f32
    %30 = vector.broadcast %cst_26 : f32 to vector<8x8xf32>
    %31 = arith.mulf %29, %30 : vector<8x8xf32>
    %cst_27 = arith.constant 0.000000e+00 : f32
    %32 = vector.broadcast %cst_27 : f32 to vector<1x8xf32>
    %33 = arith.cmpf oeq, %20, %32 : vector<1x8xf32>
    %cst_28 = arith.constant -4.2949673E+9 : f32
    %34 = vector.shape_cast %33 : vector<1x8xi1> to vector<1x8xi1>
    %35 = vector.broadcast %34 : vector<1x8xi1> to vector<8x8xi1>
    %36 = vector.broadcast %cst_28 : f32 to vector<8x8xf32>
    %37 = arith.select %35, %36, %31 : vector<8x8xi1>, vector<8x8xf32>
    %cst_29 = arith.constant -4.2949673E+9 : f32
    %38 = vector.broadcast %cst_29 : f32 to vector<8x8xf32>
    %39 = arith.select %25, %37, %38 : vector<8x8xi1>, vector<8x8xf32>
    %cst_30 = arith.constant dense<0xFF800000> : vector<8xf32>
    %40 = vector.multi_reduction <maximumf>, %39, %cst_30 [1] : vector<8x8xf32> to vector<8xf32>
    %41 = vector.shape_cast %40 : vector<8xf32> to vector<8x1xf32>
    %42 = vector.broadcast %41 : vector<8x1xf32> to vector<8x8xf32>
    %43 = arith.subf %39, %42 : vector<8x8xf32>
    %44 = math.exp %43 : vector<8x8xf32>
    %cst_31 = arith.constant dense<0.000000e+00> : vector<8xf32>
    %45 = vector.multi_reduction <add>, %44, %cst_31 [1] : vector<8x8xf32> to vector<8xf32>
    %46 = vector.shape_cast %45 : vector<8xf32> to vector<8x1xf32>
    %47 = vector.broadcast %46 : vector<8x1xf32> to vector<8x8xf32>
    %48 = arith.divf %44, %47 : vector<8x8xf32>
    %49 = vector.broadcast %22 : vector<8x1xf32> to vector<8x8xf32>
    %50 = arith.mulf %48, %49 : vector<8x8xf32>
    %cst_32 = arith.constant dense<0.000000e+00> : vector<8x8xf32>
    %51 = tpu.matmul %50, %28, %cst_32 {dimension_numbers = #tpu.dot_dimension_numbers<[1], [0], [0], [1], [0, 0, 1, 1], [], []>} : vector<8x8xf32>, vector<8x8xf32>, vector<8x8xf32> -> vector<8x8xf32>
    %52 = vector.extract_strided_slice %8 {offsets = [0, 8], sizes = [8, 8], strides = [1, 1]} : vector<8x32xf32> to vector<8x8xf32>
    %53 = vector.extract_strided_slice %13 {offsets = [0, 8], sizes = [8, 8], strides = [1, 1]} : vector<8x32xf32> to vector<8x8xf32>
    %54 = vector.extract_strided_slice %18 {offsets = [0, 8], sizes = [8, 8], strides = [1, 1]} : vector<8x32xf32> to vector<8x8xf32>
    %cst_33 = arith.constant dense<0.000000e+00> : vector<8x8xf32>
    %55 = tpu.matmul %52, %53, %cst_33 {dimension_numbers = #tpu.dot_dimension_numbers<[1], [1], [0], [0], [0, 0, 1, 0], [], []>} : vector<8x8xf32>, vector<8x8xf32>, vector<8x8xf32> -> vector<8x8xf32>
    %cst_34 = arith.constant 0.353553385 : f32
    %56 = vector.broadcast %cst_34 : f32 to vector<8x8xf32>
    %57 = arith.mulf %55, %56 : vector<8x8xf32>
    %cst_35 = arith.constant 0.000000e+00 : f32
    %58 = vector.broadcast %cst_35 : f32 to vector<1x8xf32>
    %59 = arith.cmpf oeq, %20, %58 : vector<1x8xf32>
    %cst_36 = arith.constant -4.2949673E+9 : f32
    %60 = vector.shape_cast %59 : vector<1x8xi1> to vector<1x8xi1>
    %61 = vector.broadcast %60 : vector<1x8xi1> to vector<8x8xi1>
    %62 = vector.broadcast %cst_36 : f32 to vector<8x8xf32>
    %63 = arith.select %61, %62, %57 : vector<8x8xi1>, vector<8x8xf32>
    %cst_37 = arith.constant -4.2949673E+9 : f32
    %64 = vector.broadcast %cst_37 : f32 to vector<8x8xf32>
    %65 = arith.select %25, %63, %64 : vector<8x8xi1>, vector<8x8xf32>
    %cst_38 = arith.constant dense<0xFF800000> : vector<8xf32>
    %66 = vector.multi_reduction <maximumf>, %65, %cst_38 [1] : vector<8x8xf32> to vector<8xf32>
    %67 = vector.shape_cast %66 : vector<8xf32> to vector<8x1xf32>
    %68 = vector.broadcast %67 : vector<8x1xf32> to vector<8x8xf32>
    %69 = arith.subf %65, %68 : vector<8x8xf32>
    %70 = math.exp %69 : vector<8x8xf32>
    %cst_39 = arith.constant dense<0.000000e+00> : vector<8xf32>
    %71 = vector.multi_reduction <add>, %70, %cst_39 [1] : vector<8x8xf32> to vector<8xf32>
    %72 = vector.shape_cast %71 : vector<8xf32> to vector<8x1xf32>
    %73 = vector.broadcast %72 : vector<8x1xf32> to vector<8x8xf32>
    %74 = arith.divf %70, %73 : vector<8x8xf32>
    %75 = vector.broadcast %22 : vector<8x1xf32> to vector<8x8xf32>
    %76 = arith.mulf %74, %75 : vector<8x8xf32>
    %cst_40 = arith.constant dense<0.000000e+00> : vector<8x8xf32>
    %77 = tpu.matmul %76, %54, %cst_40 {dimension_numbers = #tpu.dot_dimension_numbers<[1], [0], [0], [1], [0, 0, 1, 1], [], []>} : vector<8x8xf32>, vector<8x8xf32>, vector<8x8xf32> -> vector<8x8xf32>
    %78 = vector.extract_strided_slice %8 {offsets = [0, 16], sizes = [8, 8], strides = [1, 1]} : vector<8x32xf32> to vector<8x8xf32>
    %79 = vector.extract_strided_slice %13 {offsets = [0, 16], sizes = [8, 8], strides = [1, 1]} : vector<8x32xf32> to vector<8x8xf32>
    %80 = vector.extract_strided_slice %18 {offsets = [0, 16], sizes = [8, 8], strides = [1, 1]} : vector<8x32xf32> to vector<8x8xf32>
    %cst_41 = arith.constant dense<0.000000e+00> : vector<8x8xf32>
    %81 = tpu.matmul %78, %79, %cst_41 {dimension_numbers = #tpu.dot_dimension_numbers<[1], [1], [0], [0], [0, 0, 1, 0], [], []>} : vector<8x8xf32>, vector<8x8xf32>, vector<8x8xf32> -> vector<8x8xf32>
    %cst_42 = arith.constant 0.353553385 : f32
    %82 = vector.broadcast %cst_42 : f32 to vector<8x8xf32>
    %83 = arith.mulf %81, %82 : vector<8x8xf32>
    %cst_43 = arith.constant 0.000000e+00 : f32
    %84 = vector.broadcast %cst_43 : f32 to vector<1x8xf32>
    %85 = arith.cmpf oeq, %20, %84 : vector<1x8xf32>
    %cst_44 = arith.constant -4.2949673E+9 : f32
    %86 = vector.shape_cast %85 : vector<1x8xi1> to vector<1x8xi1>
    %87 = vector.broadcast %86 : vector<1x8xi1> to vector<8x8xi1>
    %88 = vector.broadcast %cst_44 : f32 to vector<8x8xf32>
    %89 = arith.select %87, %88, %83 : vector<8x8xi1>, vector<8x8xf32>
    %cst_45 = arith.constant -4.2949673E+9 : f32
    %90 = vector.broadcast %cst_45 : f32 to vector<8x8xf32>
    %91 = arith.select %25, %89, %90 : vector<8x8xi1>, vector<8x8xf32>
    %cst_46 = arith.constant dense<0xFF800000> : vector<8xf32>
    %92 = vector.multi_reduction <maximumf>, %91, %cst_46 [1] : vector<8x8xf32> to vector<8xf32>
    %93 = vector.shape_cast %92 : vector<8xf32> to vector<8x1xf32>
    %94 = vector.broadcast %93 : vector<8x1xf32> to vector<8x8xf32>
    %95 = arith.subf %91, %94 : vector<8x8xf32>
    %96 = math.exp %95 : vector<8x8xf32>
    %cst_47 = arith.constant dense<0.000000e+00> : vector<8xf32>
    %97 = vector.multi_reduction <add>, %96, %cst_47 [1] : vector<8x8xf32> to vector<8xf32>
    %98 = vector.shape_cast %97 : vector<8xf32> to vector<8x1xf32>
    %99 = vector.broadcast %98 : vector<8x1xf32> to vector<8x8xf32>
    %100 = arith.divf %96, %99 : vector<8x8xf32>
    %101 = vector.broadcast %22 : vector<8x1xf32> to vector<8x8xf32>
    %102 = arith.mulf %100, %101 : vector<8x8xf32>
    %cst_48 = arith.constant dense<0.000000e+00> : vector<8x8xf32>
    %103 = tpu.matmul %102, %80, %cst_48 {dimension_numbers = #tpu.dot_dimension_numbers<[1], [0], [0], [1], [0, 0, 1, 1], [], []>} : vector<8x8xf32>, vector<8x8xf32>, vector<8x8xf32> -> vector<8x8xf32>
    %104 = vector.extract_strided_slice %8 {offsets = [0, 24], sizes = [8, 8], strides = [1, 1]} : vector<8x32xf32> to vector<8x8xf32>
    %105 = vector.extract_strided_slice %13 {offsets = [0, 24], sizes = [8, 8], strides = [1, 1]} : vector<8x32xf32> to vector<8x8xf32>
    %106 = vector.extract_strided_slice %18 {offsets = [0, 24], sizes = [8, 8], strides = [1, 1]} : vector<8x32xf32> to vector<8x8xf32>
    %cst_49 = arith.constant dense<0.000000e+00> : vector<8x8xf32>
    %107 = tpu.matmul %104, %105, %cst_49 {dimension_numbers = #tpu.dot_dimension_numbers<[1], [1], [0], [0], [0, 0, 1, 0], [], []>} : vector<8x8xf32>, vector<8x8xf32>, vector<8x8xf32> -> vector<8x8xf32>
    %cst_50 = arith.constant 0.353553385 : f32
    %108 = vector.broadcast %cst_50 : f32 to vector<8x8xf32>
    %109 = arith.mulf %107, %108 : vector<8x8xf32>
    %cst_51 = arith.constant 0.000000e+00 : f32
    %110 = vector.broadcast %cst_51 : f32 to vector<1x8xf32>
    %111 = arith.cmpf oeq, %20, %110 : vector<1x8xf32>
    %cst_52 = arith.constant -4.2949673E+9 : f32
    %112 = vector.shape_cast %111 : vector<1x8xi1> to vector<1x8xi1>
    %113 = vector.broadcast %112 : vector<1x8xi1> to vector<8x8xi1>
    %114 = vector.broadcast %cst_52 : f32 to vector<8x8xf32>
    %115 = arith.select %113, %114, %109 : vector<8x8xi1>, vector<8x8xf32>
    %cst_53 = arith.constant -4.2949673E+9 : f32
    %116 = vector.broadcast %cst_53 : f32 to vector<8x8xf32>
    %117 = arith.select %25, %115, %116 : vector<8x8xi1>, vector<8x8xf32>
    %cst_54 = arith.constant dense<0xFF800000> : vector<8xf32>
    %118 = vector.multi_reduction <maximumf>, %117, %cst_54 [1] : vector<8x8xf32> to vector<8xf32>
    %119 = vector.shape_cast %118 : vector<8xf32> to vector<8x1xf32>
    %120 = vector.broadcast %119 : vector<8x1xf32> to vector<8x8xf32>
    %121 = arith.subf %117, %120 : vector<8x8xf32>
    %122 = math.exp %121 : vector<8x8xf32>
    %cst_55 = arith.constant dense<0.000000e+00> : vector<8xf32>
    %123 = vector.multi_reduction <add>, %122, %cst_55 [1] : vector<8x8xf32> to vector<8xf32>
    %124 = vector.shape_cast %123 : vector<8xf32> to vector<8x1xf32>
    %125 = vector.broadcast %124 : vector<8x1xf32> to vector<8x8xf32>
    %126 = arith.divf %122, %125 : vector<8x8xf32>
    %127 = vector.broadcast %22 : vector<8x1xf32> to vector<8x8xf32>
    %128 = arith.mulf %126, %127 : vector<8x8xf32>
    %cst_56 = arith.constant dense<0.000000e+00> : vector<8x8xf32>
    %129 = tpu.matmul %128, %106, %cst_56 {dimension_numbers = #tpu.dot_dimension_numbers<[1], [0], [0], [1], [0, 0, 1, 1], [], []>} : vector<8x8xf32>, vector<8x8xf32>, vector<8x8xf32> -> vector<8x8xf32>
    %130 = tpu.concatenate %51, %77, %103, %129 in 1 : vector<8x8xf32>, vector<8x8xf32>, vector<8x8xf32>, vector<8x8xf32> -> vector<8x32xf32>
    %131 = arith.addf %130, %1 : vector<8x32xf32>
    %c0_57 = arith.constant 0 : index
    %c0_58 = arith.constant 0 : index
    %c0_59 = arith.constant 0 : index
    %132 = vector.load %arg11[%c0_57, %c0_58, %c0_59] : memref<1x8x32xf32, #tpu.memory_space<vmem>>, vector<1x8x32xf32>
    %133 = vector.shape_cast %132 : vector<1x8x32xf32> to vector<8x32xf32>
    %134 = vector.shape_cast %131 : vector<8x32xf32> to vector<1x8x32xf32>
    tpu.vector_store %arg11[%c0_57, %c0_58, %c0_59], %134 {strides = array<i32>} : memref<1x8x32xf32, #tpu.memory_space<vmem>>, vector<1x8x32xf32>,
    return
  }
  func.func @transform_0(%arg0: i32) -> (i32, i32, i32) {
    %c0_i32 = arith.constant 0 : i32
    %c0_i32_0 = arith.constant 0 : i32
    %c0_i32_1 = arith.constant 0 : i32
    return %arg0, %c0_i32, %c0_i32_0 : i32, i32, i32
  }
  func.func @transform_1(%arg0: i32) -> (i32, i32, i32) {
    %c0_i32 = arith.constant 0 : i32
    %c0_i32_0 = arith.constant 0 : i32
    %c0_i32_1 = arith.constant 0 : i32
    return %arg0, %c0_i32, %c0_i32_0 : i32, i32, i32
  }
  func.func @transform_2(%arg0: i32) -> (i32, i32) {
    %c0_i32 = arith.constant 0 : i32
    %c0_i32_0 = arith.constant 0 : i32
    %c0_i32_1 = arith.constant 0 : i32
    return %c0_i32, %c0_i32_0 : i32, i32
  }
  func.func @transform_3(%arg0: i32) -> (i32, i32) {
    %c0_i32 = arith.constant 0 : i32
    %c0_i32_0 = arith.constant 0 : i32
    %c0_i32_1 = arith.constant 0 : i32
    return %c0_i32, %c0_i32_0 : i32, i32
  }
  func.func @transform_4(%arg0: i32) -> (i32, i32) {
    %c0_i32 = arith.constant 0 : i32
    %c0_i32_0 = arith.constant 0 : i32
    %c0_i32_1 = arith.constant 0 : i32
    return %c0_i32, %c0_i32_0 : i32, i32
  }
  func.func @transform_5(%arg0: i32) -> (i32, i32) {
    %c0_i32 = arith.constant 0 : i32
    %c0_i32_0 = arith.constant 0 : i32
    %c0_i32_1 = arith.constant 0 : i32
    return %c0_i32, %c0_i32_0 : i32, i32
  }
  func.func @transform_6(%arg0: i32) -> (i32, i32) {
    %c0_i32 = arith.constant 0 : i32
    %c0_i32_0 = arith.constant 0 : i32
    %c0_i32_1 = arith.constant 0 : i32
    return %c0_i32, %c0_i32_0 : i32, i32
  }
  func.func @transform_7(%arg0: i32) -> (i32, i32) {
    %c0_i32 = arith.constant 0 : i32
    %c0_i32_0 = arith.constant 0 : i32
    %c0_i32_1 = arith.constant 0 : i32
    return %c0_i32, %c0_i32_0 : i32, i32
  }
  func.func @transform_8(%arg0: i32) -> (i32, i32, i32) {
    %c0_i32 = arith.constant 0 : i32
    %c0_i32_0 = arith.constant 0 : i32
    %c0_i32_1 = arith.constant 0 : i32
    return %arg0, %c0_i32, %c0_i32_0 : i32, i32, i32
  }
  func.func @transform_9(%arg0: i32) -> (i32, i32, i32) {
    %c0_i32 = arith.constant 0 : i32
    %c0_i32_0 = arith.constant 0 : i32
    %c0_i32_1 = arith.constant 0 : i32
    return %arg0, %c0_i32, %c0_i32_0 : i32, i32, i32
  }
  func.func @transform_10(%arg0: i32) -> (i32, i32, i32) {
    %c0_i32 = arith.constant 0 : i32
    %c0_i32_0 = arith.constant 0 : i32
    %c0_i32_1 = arith.constant 0 : i32
    return %arg0, %c0_i32, %c0_i32_0 : i32, i32, i32
  }
}

</mosaic_0001>

<bundles_post_ra>
// kernel: tpu_custom_call.1
= control target key start
LH: loop header
LB: loop body
LE: loop exit
PB: predicated region body
PF: predicated region fallthrough
CT: control target
= control target key end

     0   :  { %s2688_s0 = inlined_call_operand.hbm [shape: f32[2,8,32], index: 0, kind: input, shape index: {}]   ;;  %s2689_s1 = inlined_call_operand.hbm [shape: f32[2,8,32], index: 1, kind: input, shape index: {}]   ;;  %s2690_s2 = inlined_call_operand.hbm [shape: f32[32,32], index: 2, kind: input, shape index: {}]   ;;  %s2691_s3 = inlined_call_operand.hbm [shape: f32[1,32], index: 3, kind: input, shape index: {}]   ;;  %s2692_s4 = inlined_call_operand.vmem [shape: f32[32,32], index: 4, kind: input, shape index: {}]   ;;  %s2693_s5 = inlined_call_operand.hbm [shape: f32[1,32], index: 5, kind: input, shape index: {}]   ;;  %s2694_s6 = inlined_call_operand.hbm [shape: f32[32,32], index: 6, kind: input, shape index: {}]   ;;  %s2695_s7 = inlined_call_operand.vmem [shape: f32[1,32], index: 7, kind: input, shape index: {}]   ;;  %s2696_s8 = inlined_call_operand.vmem [shape: f32[2,1,8], index: 8, kind: input, shape index: {}]   ;;  %s2697_s9 = inlined_call_operand.vmem [shape: f32[2,8,1], index: 9, kind: input, shape index: {}]   ;;  %s2698_s10 = inlined_call_operand.hbm [shape: f32[2,8,32], index: 10, kind: output, shape index: {}]  }
   0x1   :  { %2704 = sst [smem:[#allocation21_spill]] %s2690_s2 }
   0x2   :  { %2705 = sst [smem:[#allocation22_spill]] %s2691_s3 }
   0x3   :  { %2706 = sst [smem:[#allocation23_spill]] %s2693_s5 }
   0x4   :  { %2707 = sst [smem:[#allocation24_spill]] %s2694_s6 }
   0x5   :  { %2708 = sst [smem:[#allocation25_spill]] %s2697_s9 }
   0x6   :  { %2709 = sst [smem:[#allocation26_spill]] %s2698_s10 }
   0x7   :  { %15 = vsyncpa [#allocation3], 0 }
   0x8   :  { %17 = vsyncpa [#allocation3 + $0x1], 0 }
   0x9   :  { %18 = vsyncpa [#allocation6], 0 }
   0xa   :  { %20 = vsyncpa [#allocation6 + $0x1], 0 }
   0xb   :  { %21 = vsyncpa [#allocation9], 0 }
   0xc   :  { %22 = vsyncpa [#allocation12], 0 }
   0xd   :  { %23 = vsyncpa [#allocation4], 0 }
   0xe   :  { %25 = vsyncpa [#allocation4 + $0x1], 0  ;;  %s2242_s13 = smov 0   ;;  %s2244_s14 = smov 0  }
   0xf   :  { %s2246_s15 = smov 0   ;;  %s2248_s16 = smov 0  }
  0x10 LB: > { %s2168_s17 = smov [#allocation7]   ;;  %s2263_s19 = sadd.s32 4294967295, %s2166_s16   ;;  %s2166_s16 = sphi %s2248_s16, %s2741_s16   ;;  %s2162_s15 = sphi %s2246_s15, %s2740_s15   ;;  %s2158_s14 = sphi %s2244_s14, %s2739_s14   ;;  %s2154_s13 = sphi %s2242_s13, %s2738_s13  }
  0x11   : > { %s304_s18 = sshll.u32 %s2168_s17, 4  ;;  %p1627_p0 = scmp.ge.s32.totalorder %s2166_s16, 1  ;;  %s2268_s18 = int_to_ptr.vmem [resolvable:$true] %s304_s18 }
  0x12   : > { %p2700_p1 = scmp.eq.s32.totalorder %s2263_s19, 0  ;;  %p292_p2 = scmp.lt.s32.totalorder %s2166_s16, 3 }
  0x13   : > { %s2169_s21 = smov [#allocation8]   ;;  %s2170_s24 = smov [#allocation10]  }
  0x14   : > { %p2270_p3 = pnand %p1627_p0, %p292_p2  ;;  %s318_s22 = sshll.u32 %s2169_s21, 4  ;;  %s2283_s22 = int_to_ptr.vmem [resolvable:$true] %s318_s22 }
  0x15   : > { %s332_s25 = sshll.u32 %s2170_s24, 4  ;;  %s2712_s2 = sld [smem:[#allocation21_spill]]  ;;  %s2285_s25 = int_to_ptr.vmem [resolvable:$true] %s332_s25 }
  0x16   : > { %s2710_s20 = scalar_select %p2270_p3, 1, 0 }
  0x17   : > { %p1812_p5 = pneg %p2270_p3 }
  0x19   : > { %p2279_p6 = pnand %p1812_p5, %p2700_p1 }
  0x1b   : > { %s1912_s28 = scalar_lea.hbm %s2712_s2, 512  ;;  %p2295_p8 = pneg %p2279_p6 }
  0x1c   : > { %p1913_p7 = scmp.ne.s32.totalorder %s2712_s2, %s1912_s28  ;;  %p1919_p11 = scmp.lt.u32.totalorder %s1912_s28, %s2712_s2 }
  0x1e   : > { %p1915_p9 = pnand %p2295_p8, %p1913_p7 }
  0x20   : > { %p1916_p10 = pneg %p1915_p9 }
  0x22   : > { %p1921_p12 = pnand %p1919_p11, %p1916_p10 }
  0x24   : > { %1924 = shalt.err (!%p1921_p12)
}
  0x25   : > { %s1925_s21 = scalar_lea.vmem %s2268_s18, 512  ;;  %p1933_p5 = scmp.lt.s32.totalorder %s2268_s18, %s2268_s18 }
  0x26   : > { %p1926_p13 = scmp.ne.s32.totalorder %s2268_s18, %s1925_s21  ;;  %p1934_p4 = scmp.lt.s32.totalorder %s1925_s21, %s1925_s21 }
  0x28   : > { %p1928_p0 = pnand %p1926_p13, %p2295_p8  ;;  %p1935_p7 = por %p1934_p4, %p1933_p5 }
  0x2a   : > { %p1929_p2 = pneg %p1928_p0 }
  0x2c   : > { %p1936_p9 = pnand %p1935_p7, %p1929_p2 }
  0x2e   : > { %1939 = shalt.err (!%p1936_p9)
}
  0x2f   : > { %s2171_s24 = smov 128   ;;  %s2172_s26 = smov 8  }
  0x30   : > { %1815 = dma.hbm_to_vmem [thread:$0]  (!%p2279_p6), %s2712_s2, 512, %s2268_s18, [#allocation6], %s2171_s24, %s2171_s24, %s2172_s26  }
  0x31   : > { %s2714_s3 = sld [smem:[#allocation22_spill]] }
  0x37   : > { %s1940_s12 = scalar_lea.hbm %s2714_s3, 16 }
  0x38   : > { %p1941_p4 = scmp.ne.s32.totalorder %s2714_s3, %s1940_s12  ;;  %p1947_p12 = scmp.lt.u32.totalorder %s1940_s12, %s2714_s3 }
  0x3a   : > { %p1943_p10 = pnand %p1941_p4, %p2295_p8 }
  0x3c   : > { %p1944_p11 = pneg %p1943_p10 }
  0x3e   : > { %p1949_p13 = pnand %p1947_p12, %p1944_p11 }
  0x40   : > { %1952 = shalt.err (!%p1949_p13)
}
  0x41   : > { %s1953_s18 = scalar_lea.vmem %s2283_s22, 16  ;;  %s1960_s27 = scalar_lea.vmem %s2283_s22, 32 }
  0x42   : > { %p1954_p0 = scmp.ne.s32.totalorder %s2283_s22, %s1953_s18  ;;  %p1961_p7 = scmp.lt.s32.totalorder %s2283_s22, %s2283_s22 }
  0x43   : > { %p1962_p9 = scmp.lt.s32.totalorder %s1960_s27, %s1953_s18 }
  0x44   : > { %p1956_p2 = pnand %p1954_p0, %p2295_p8 }
  0x45   : > { %p1963_p4 = por %p1962_p9, %p1961_p7 }
  0x46   : > { %p1957_p5 = pneg %p1956_p2 }
  0x48   : > { %p1964_p10 = pnand %p1963_p4, %p1957_p5 }
  0x4a   : > { %1967 = shalt.err (!%p1964_p10)
}
  0x4b   : > { %1818 = dma.hbm_to_vmem [thread:$0]  (!%p2279_p6), %s2714_s3, 16, %s2283_s22, [#allocation9]  }
  0x4c   : > { %s2715_s5 = sld [smem:[#allocation23_spill]] }
  0x52   : > { %s1968_s30 = scalar_lea.hbm %s2715_s5, 16 }
  0x53   : > { %p1969_p11 = scmp.ne.s32.totalorder %s2715_s5, %s1968_s30  ;;  %p1975_p0 = scmp.lt.u32.totalorder %s1968_s30, %s2715_s5 }
  0x55   : > { %p1971_p12 = pnand %p1969_p11, %p2295_p8 }
  0x57   : > { %p1972_p13 = pneg %p1971_p12 }
  0x59   : > { %p1977_p2 = pnand %p1975_p0, %p1972_p13 }
  0x5b   : > { %1980 = shalt.err (!%p1977_p2)
}
  0x5c   : > { %s1981_s22 = scalar_lea.vmem %s2285_s25, 16  ;;  %s1988_s27 = scalar_lea.vmem %s2285_s25, 32 }
  0x5d   : > { %p1982_p5 = scmp.ne.s32.totalorder %s2285_s25, %s1981_s22  ;;  %p1989_p4 = scmp.lt.s32.totalorder %s2285_s25, %s2285_s25 }
  0x5e   : > { %p1990_p10 = scmp.lt.s32.totalorder %s1988_s27, %s1981_s22 }
  0x5f   : > { %p1984_p7 = pnand %p1982_p5, %p2295_p8 }
  0x60   : > { %p1991_p11 = por %p1990_p10, %p1989_p4 }
  0x61   : > { %p1985_p9 = pneg %p1984_p7 }
  0x63   : > { %p1992_p12 = pnand %p1991_p11, %p1985_p9 }
  0x65   : > { %1995 = shalt.err (!%p1992_p12)
}
  0x66   : > { %1821 = dma.hbm_to_vmem [thread:$0]  (!%p2279_p6), %s2715_s5, 16, %s2285_s25, [#allocation9]  }
  0x67   : > { %s2173_s28 = smov [#allocation11]   ;;  %s2716_s6 = sld [smem:[#allocation24_spill]] }
  0x68   : > { %s342_s29 = sshll.u32 %s2173_s28, 4  ;;  %s343_s29 = int_to_ptr.vmem [resolvable:$true] %s342_s29 }
  0x6d   : > { %s1996_s17 = scalar_lea.hbm %s2716_s6, 512 }
  0x6e   : > { %p1997_p13 = scmp.ne.s32.totalorder %s2716_s6, %s1996_s17  ;;  %p2003_p5 = scmp.lt.u32.totalorder %s1996_s17, %s2716_s6 }
  0x70   : > { %p1999_p0 = pnand %p1997_p13, %p2295_p8 }
  0x72   : > { %p2000_p2 = pneg %p1999_p0 }
  0x74   : > { %p2005_p7 = pnand %p2003_p5, %p2000_p2 }
  0x76   : > { %2008 = shalt.err (!%p2005_p7)
}
  0x77   : > { %s2009_s25 = scalar_lea.vmem %s343_s29, 512  ;;  %p2017_p11 = scmp.lt.s32.totalorder %s343_s29, %s343_s29 }
  0x78   : > { %p2010_p9 = scmp.ne.s32.totalorder %s343_s29, %s2009_s25  ;;  %p2018_p12 = scmp.lt.s32.totalorder %s2009_s25, %s2009_s25 }
  0x7a   : > { %p2012_p4 = pnand %p2010_p9, %p2295_p8  ;;  %p2019_p1 = por %p2018_p12, %p2017_p11 }
  0x7c   : > { %p2013_p10 = pneg %p2012_p4 }
  0x7e   : > { %p2020_p3 = pnand %p2019_p1, %p2013_p10 }
  0x80   : > { %2023 = shalt.err (!%p2020_p3)
}
  0x81   : > { %1824 = dma.hbm_to_vmem [thread:$0]  (!%p2279_p6), %s2716_s6, 512, %s343_s29, [#allocation12], %s2171_s24, %s2171_s24, %s2172_s26  }
  0x82   : > { %s1626_s23 = sadd.s32 4294967294, %s2166_s16   ;;  %s2390_s11 = sadd.s32 1, %s2166_s16  }
  0x83   : > { %s35_s28 = ssub.s32 %s2166_s16, %s2390_s11  ;;  %s38_s30 = sadd.s32 1, %s2162_s15 }
  0x84   : > { %p36_p1 = scmp.eq.s32.totalorder %s35_s28, 0  ;;  %p45_p3 = scmp.ne.s32.totalorder %s2162_s15, %s2158_s14 }
  0x85   : > { %p46_p8 = scmp.eq.s32.totalorder %s2166_s16, 0  ;;  %p51_p13 = scmp.ne.s32.totalorder %s2158_s14, %s2154_s13 }
  0x86   : > { %s2401_s12 = scalar_select %p36_p1, %s2162_s15, %s38_s30  }
  0x87   : > { %p2403_p0 = por %p46_p8, %p45_p3  ;;  %p2719_p2 = scmp.eq.s32.totalorder %s2263_s19, 0 }
  0x88   : > { %2717 = sst [smem:[#allocation20_spill]] %s2401_s12  ;;  %p279_p5 = scmp.eq.s32.totalorder %s2263_s19, 1 }
  0x89   : > { %p2409_p6 = por %p2719_p2, %p51_p13  ;;  %p285_p7 = scmp.eq.s32.totalorder %s1626_s23, 1 }
  0x8a   : > { %p1840_p9 = scmp.lt.s32.totalorder %s2166_s16, 2  ;;  %s359_s26 = sand.u32 1, %s2162_s15  }
  0x8b   : > { %s2720_s24 = scalar_select %p2409_p6, 1, 0 }
  0x8c   : > { %p2416_p4 = por %p279_p5, %p45_p3  ;;  %p2420_p10 = por %p285_p7, %p51_p13 }
  0x8d   : > { %s2424_s18 = sshll.u32 %s359_s26, 3  ;;  %s1634_s22 = sshll.u32 %s2166_s16, 7 }
  0x8e   : > { %s2721_s29 = scalar_select %p2416_p4, 1, 0 }
  0x8f   : > { %s2722_s21 = scalar_select %p2420_p10, 1, 0 }
  0x90   : > { %s2430_s9 = scalar_lea.hbm %s2688_s0, %s1634_s22  ;;  %s363_s10 = scalar_lea.vmem [#allocation2], %s2424_s18 }
  0x91   : > { %s370_s23 = sshll.u32 %s363_s10, 4  ;;  %p2437_p11 = pnand %p1840_p9, %p2403_p0  ;;  %s2433_s23 = int_to_ptr.vmem [resolvable:$true] %s370_s23 }
  0x92   : > { %s2444_s27 = scalar_lea.hbm %s2689_s1, %s1634_s22  ;;  %s377_s25 = sand.u32 1, %s2166_s16  }
  0x93   : > { %s360_s3 = scalar_lea.sflag [#allocation3], %s359_s26  ;;  %s2024_s5 = scalar_lea.hbm %s2430_s9, 128 }
  0x94   : > { %p2025_p12 = scmp.ne.s32.totalorder %s2430_s9, %s2024_s5  ;;  %p2026_p1 = pneg %p2437_p11 }
  0x95   : > { %s2029_s6 = scalar_lea.hbm %s2688_s0, 256  ;;  %p2030_p13 = scmp.lt.u32.totalorder %s2430_s9, %s2688_s0 }
  0x96   : > { %p2027_p3 = pnand %p2026_p1, %p2025_p12  ;;  %p2031_p0 = scmp.lt.u32.totalorder %s2029_s6, %s2024_s5 }
  0x97   : > { %p2033_p5 = scmp.lt.u32.totalorder %s2024_s5, %s2430_s9 }
  0x98   : > { %p2028_p8 = pneg %p2027_p3  ;;  %p2032_p2 = por %p2031_p0, %p2030_p13 }
  0x9a   : > { %p2034_p7 = por %p2033_p5, %p2032_p2 }
  0x9c   : > { %p2035_p9 = pnand %p2034_p7, %p2028_p8 }
  0x9e   : > { %2038 = shalt.err (!%p2035_p9)
}
  0x9f   : > { %s2039_s26 = scalar_lea.vmem %s2433_s23, 128  ;;  %s2174_s22 = smov [#allocation2]  }
  0xa0   : > { %p2040_p12 = scmp.ne.s32.totalorder %s2433_s23, %s2039_s26  ;;  %s2044_s30 = sshll.u32 %s2174_s22, 4  ;;  %s2045_s30 = int_to_ptr.vmem [resolvable:$false] %s2044_s30 }
  0xa1   : > { %s2046_s12 = scalar_lea.vmem %s2045_s30, 256  ;;  %p2047_p4 = scmp.lt.s32.totalorder %s2433_s23, %s2045_s30 }
  0xa2   : > { %p2042_p3 = pnand %p2040_p12, %p2026_p1  ;;  %p2048_p13 = scmp.lt.s32.totalorder %s2046_s12, %s2039_s26 }
  0xa4   : > { %p2043_p10 = pneg %p2042_p3  ;;  %p2049_p0 = por %p2048_p13, %p2047_p4 }
  0xa6   : > { %p2050_p2 = pnand %p2049_p0, %p2043_p10 }
  0xa8   : > { %2053 = shalt.err (!%p2050_p2)
}
  0xa9   : > { %1828 = dma.hbm_to_vmem [thread:$0]  (!%p2437_p11), %s2430_s9, 128, %s2433_s23, %s360_s3  }
  0xaa   : > { %s381_s5 = scalar_lea.vmem [#allocation5], %s2424_s18  ;;  %s378_s17 = scalar_lea.sflag [#allocation6], %s377_s25 }
  0xab   : > { %s388_s6 = sshll.u32 %s381_s5, 4  ;;  %s2054_s10 = scalar_lea.hbm %s2444_s27, 128  ;;  %s389_s6 = int_to_ptr.vmem [resolvable:$true] %s388_s6 }
  0xac   : > { %p2055_p4 = scmp.ne.s32.totalorder %s2444_s27, %s2054_s10  ;;  %s2059_s22 = scalar_lea.hbm %s2689_s1, 256 }
  0xad   : > { %p2060_p5 = scmp.lt.u32.totalorder %s2444_s27, %s2689_s1  ;;  %p2061_p7 = scmp.lt.u32.totalorder %s2059_s22, %s2054_s10 }
  0xae   : > { %p2057_p10 = pnand %p2055_p4, %p2026_p1  ;;  %p2063_p12 = scmp.lt.u32.totalorder %s2054_s10, %s2444_s27 }
  0xaf   : > { %p2062_p9 = por %p2061_p7, %p2060_p5 }
  0xb0   : > { %p2058_p8 = pneg %p2057_p10 }
  0xb1   : > { %p2064_p3 = por %p2063_p12, %p2062_p9 }
  0xb3   : > { %p2065_p13 = pnand %p2064_p3, %p2058_p8 }
  0xb5   : > { %2068 = shalt.err (!%p2065_p13)
}
  0xb6   : > { %s2069_s3 = scalar_lea.vmem %s389_s6, 128  ;;  %s2175_s18 = smov [#allocation5]  }
  0xb7   : > { %p2070_p0 = scmp.ne.s32.totalorder %s389_s6, %s2069_s3  ;;  %s2074_s9 = sshll.u32 %s2175_s18, 4  ;;  %s2075_s9 = int_to_ptr.vmem [resolvable:$false] %s2074_s9 }
  0xb8   : > { %s2076_s23 = scalar_lea.vmem %s2075_s9, 256  ;;  %p2077_p10 = scmp.lt.s32.totalorder %s389_s6, %s2075_s9 }
  0xb9   : > { %p2072_p2 = pnand %p2070_p0, %p2026_p1  ;;  %p2078_p6 = scmp.lt.s32.totalorder %s2076_s23, %s2069_s3 }
  0xbb   : > { %p2073_p4 = pneg %p2072_p2  ;;  %p2079_p5 = por %p2078_p6, %p2077_p10 }
  0xbd   : > { %p2080_p7 = pnand %p2079_p5, %p2073_p4 }
  0xbf   : > { %2083 = shalt.err (!%p2080_p7)
}
  0xc0   : > { %1831 = dma.hbm_to_vmem [thread:$0]  (!%p2437_p11), %s2444_s27, 128, %s389_s6, %s378_s17  }
  0xc1   : > { %p2724_p8 = scmp.ne.s32.totalorder %s2710_s20, 0 }
  0xc2   : > { %s2497_s25 = sand.u32 (!%p2724_p8), 1, %s2158_s14   ;;  %p2725_p6 = scmp.ne.s32.totalorder (!%p2724_p8), %s2720_s24, 0 }
  0xc3   : > { %410 = sbr.rel (%p2724_p8) target bundleno = 1445 (0x5a5), region = 60  ;;  %s2500_s5 = sshll.u32 (!%p2724_p8), %s2497_s25, 3 }
  0xc4   : > { %s413_s10 = scalar_lea.sflag (!%p2724_p8), [#allocation3], %s2497_s25  ;;  %s416_s2 = scalar_lea.vmem (!%p2724_p8), [#allocation2], %s2500_s5 }
  0xca   : > { %2129 = dma.done.wait (%p2725_p6), %s413_s10, 128  }
  0xcb   : > { %2131 = vsyncadd (%p2725_p6), %s413_s10, 4294967168  ;;  %s421_s20 = sand.u32 1, %s2263_s19   ;;  %s425_s27 = scalar_lea.vmem [#allocation5], %s2500_s5 }
  0xcc   : > { %s422_s28 = scalar_lea.sflag [#allocation6], %s421_s20 }
  0xcd   : > { %2133 = dma.done.wait (%p2725_p6), %s422_s28, 128  }
  0xce   : > { %2135 = vsyncadd (%p2725_p6), %s422_s28, 4294967168  ;;  %p2726_p11 = scmp.eq.s32.totalorder %s2263_s19, 0 }
  0xd0   : > { %2137 = dma.done.wait (%p2726_p11), [#allocation6], 512   ;;  %p2727_p1 = pmov %p2726_p11 }
  0xd2   : > { %2139 = vsyncadd (%p2727_p1), [#allocation6], 4294966784  ;;  %p2728_p9 = pmov %p2727_p1 }
  0xd3   : > { %p2729_p12 = pmov %p2727_p1 }
  0xd4   : > { %2141 = dma.done.wait (%p2728_p9), [#allocation9], 32  }
  0xd5   : > { %2143 = vsyncadd (%p2729_p12), [#allocation9], 4294967264  ;;  %p2730_p3 = pmov %p2727_p1 }
  0xd6   : > { %p2731_p13 = pmov %p2727_p1 }
  0xd7   : > { %2145 = dma.done.wait (%p2730_p3), [#allocation12], 512  }
  0xd8   : > { %2147 = vsyncadd (%p2731_p13), [#allocation12], 4294966784  ;;  %v2176_v0 = vmov 0.0|0.0   ;;  %vm2177_vm0 = vmmov 0   ;;  %v2178_v1 = vmov 0.0   ;;  %v584_v2 = vld [vmem:[%s2692_s4] sm:$0xff]  ;;  %v751_v41 = vlaneseq }
  0xd9   : > { %1778 = vmatprep.subr.bf16.mxu1 %v2176_v0  ;;  %1772 = vmatprep.subr.bf16.mxu0 %v2176_v0  ;;  %v585_v3 = vld [vmem:[%s2692_s4 + $0x8] sm:$0xff]  ;;  %v499_v4 = vld [vmem:[#allocation7] sm:$0xff]  ;;  %v586_v7 = vld [vmem:[%s2692_s4 + $0x10] sm:$0xff]  ;;  %vm510_vm1 = vcmask 261120   ;;  %vm756_vm2 = vcmask 64512   ;;  %s2179_s18 = smov 112  }
  0xda   : > { %1718 = vmatprep.mubr.msk.f32.mxu1 %vm2177_vm0, %v2178_v1  ;;  %1707 = vmatprep.mubr.msk.f32.mxu0 %vm2177_vm0, %v2178_v1  ;;  %v1779_v5 = vpack.c.bf16 %v585_v3, %v584_v2  ;;  %v500_v6 = vld [vmem:[#allocation7 + $0x8] sm:$0xff]  ;;  %v587_v8 = vld [vmem:[%s2692_s4 + $0x18] sm:$0xff]  ;;  %v501_v10 = vld [vmem:[#allocation7 + $0x10] sm:$0xff]  ;;  %s2180_s9 = smov 120   ;;  %s2181_s23 = smov 104   ;;  %v2182_v30 = vmov 0  }
  0xdb   : > { %v1773_v9 = vpack.c.bf16 %v500_v6, %v499_v4  ;;  %v502_v11 = vld [vmem:[#allocation7 + $0x18] sm:$0xff]  ;;  %v1782_v12 = vpack.c.bf16 %v587_v8, %v586_v7  ;;  %v2546_v15 = vld [vmem:[%s416_s2] sm:$0xff]  ;;  %1894 = vset.pattern.permute.xlu1 %v2182_v30  ;;  %1895 = vset.pattern.permute.xlu0 %v2182_v30  ;;  %p490_p0 = scmp.lt.s32.totalorder %s2263_s19, 1  ;;  %v752_v43 = vshrl.u32 %v751_v41, 7  ;;  %v754_v47 = vand.u32 127, %v751_v41  ;;  %s2732_s22 = sld [smem:[#allocation25_spill]] }
  0xdc   : > { %1780 = vmatpush3.bf16.msra.mxu1 %v1779_v5  ;;  %v1776_v13 = vpack.c.bf16 %v502_v11, %v501_v10  ;;  %v498_v14 = vld [vmem:[%s425_s27] sm:$0xff]  ;;  %v668_v16 = vld [vmem:[#allocation11] sm:$0xff]  ;;  %v1648_v22 = vld [vmem:[#allocation10] ss:$0 sm:$0xff]  ;;  %s2183_s12 = smov 8   ;;  %s2184_s3 = smov 16  }
  0xdd   : > { %1774 = vmatpush3.bf16.msra.mxu0 %v1773_v9  ;;  %1781 = vmatprep.subr.bf16.mxu1 %v2176_v0  ;;  %v669_v17 = vld [vmem:[#allocation11 + $0x8] sm:$0xff]  ;;  %v670_v18 = vld [vmem:[#allocation11 + $0x10] sm:$0xff]  ;;  %v671_v20 = vld [vmem:[#allocation11 + $0x18] sm:$0xff]  ;;  %s2592_s20 = scalar_select %p490_p0, %s2263_s19, 1  ;;  %v838_v44 = vsub.s32 0, %v752_v43  ;;  %vm755_vm5 = vcmp.ge.s32.totalorder %v752_v43, %v754_v47  ;;  %vm1454_vm6 = vcmask 130048  }
  0xde   : > { %1775 = vmatprep.subr.bf16.mxu0 %v2176_v0  ;;  %v1785_v19 = vpack.c.bf16 %v669_v17, %v668_v16  ;;  %v1788_v21 = vpack.c.bf16 %v671_v20, %v670_v18  ;;  %v1646_v24 = vld [vmem:[#allocation8] ss:$0 sm:$0xff]  ;;  %vm1456_vm7 = vcmask 195584   ;;  %s2733_s28 = sld [smem:[#allocation26_spill]]  ;;  %p2734_p4 = scmp.ne.s32.totalorder %s2721_s29, 0 }
  0xdf   : > { %v1650_v31 = vld [vmem:[%s2695_s7] ss:$0 sm:$0xff]  ;;  %s492_s24 = scalar_lea.vmem %s2696_s8, %s2592_s20  ;;  %s1645_s6 = sshll.u32 %s2592_s20, 3 }
  0xe0   : > { %1783 = vmatpush3.bf16.msra.mxu1 %v1782_v12  ;;  %v749_v42 = vld [vmem:[%s492_s24] sm:$0x1]  ;;  %s2186_s24 = smov [#allocation13]  }
  0xe1   : > { %1777 = vmatpush3.bf16.msra.mxu0 %v1776_v13  ;;  %1732 = vmatprep.subr.mxu1 %v2178_v1  ;;  %vm834_vm3 = vcmp.eq.f32.partialorder %v749_v42, 0.0  ;;  %s496_s30 = scalar_lea.vmem %s2732_s22, %s1645_s6  ;;  %s2088_s6 = sshll.u32 %s2186_s24, 4  ;;  %s2089_s6 = int_to_ptr.vmem [resolvable:$false] %s2088_s6 }
  0xe2   : > { %1784 = vmatprep.subr.bf16.mxu0 %v2176_v0  ;;  %v835_v45 = vsel %vm834_vm3, 1, %v2182_v30  ;;  %v750_v9 = vld [vmem:[%s496_s30] sm:$0xff]  ;;  %s2090_s17 = scalar_lea.vmem %s2089_s6, 256 }
  0xe3   : > { %1719 = vmatmul.mubr.msk.f32.vlgmr.msra.gmra.mrb[0].mxu1 %vm510_vm1, %v498_v14  ;;  %v839_v46 = vrot.slane %v835_v45, %v838_v44 }
  0xe4   : > { %1708 = vmatmul.mubr.msk.f32.vlgmr.msra.gmra.mrb[0].mxu0 %vm510_vm1, %v2546_v15  ;;  %1734 = vmatprep.mubr.msk.f32.mxu1 %vm2177_vm0, %v2178_v1 }
  0xe5   : > { %1729 = vmatprep.mubr.msk.f32.mxu0 %vm2177_vm0, %v2178_v1  ;;  %1786 = vmatpush3.bf16.msra.mxu0 %v1785_v19  ;;  %vm840_vm4 = vcmp.eq.s32.totalorder %v839_v46, 1 }
  0xe6   : > { %1787 = vmatprep.subr.bf16.mxu0 %v2176_v0 }
  0xe9   : > { %1789 = vmatpush3.bf16.msra.mxu0 %v1788_v21 }
  0xea   : > { %1742 = vmatprep.subr.mxu0 %v2178_v1 }
  0xec   : > { %1730 = vmatmul.mubr.msk.f32.vlgmr.msra.gmra.mrb[2].mxu0 %vm510_vm1, %v498_v14 }
  0xed   : > { %1744 = vmatprep.mubr.msk.f32.mxu0 %vm2177_vm0, %v2178_v1 }
 0x1b6   : > { %v664_v23 = vpop.f32.mrb[0].mxu1 }
 0x1b7   : > { %v665_v25 = vadd.f32 %v1648_v22, %v664_v23  ;;  %v1720_v26 = vpop.f32.mrb[1].mxu1  ;;  %v580_v27 = vpop.f32.mrb[0].mxu0 }
 0x1b8   : > { %v1709_v28 = vpop.f32.mrb[1].mxu0  ;;  %v581_v29 = vadd.f32 %v1646_v24, %v580_v27 }
 0x1b9   : > { %1105 = vrot.lane.b32.xlu1 %v665_v25, %s2179_s18  ;;  %935 = vrot.lane.b32.xlu0 %v665_v25, %s2180_s9 }
 0x1ba   : > { %1733 = vmatpush3.xpose.msk.msra.mxu1 %vm756_vm2, %v665_v25 }
 0x1bb   : > { %1737 = vmatprep.subr.mxu1 %v2178_v1 }
 0x1bd   : > { %1735 = vmatmul.mubr.msk.f32.vlgmr.msra.gmra.mrb[2].mxu1 %vm756_vm2, %v581_v29  ;;  %1103 = vrot.lane.b32.xlu1 %v581_v29, %s2179_s18 }
 0x1be   : > { %933 = vrot.lane.b32.xlu0 %v581_v29, %s2180_s9  ;;  %1739 = vmatprep.mubr.msk.f32.mxu1 %vm2177_vm0, %v2178_v1 }
 0x1bf   : > { %v745_v32 = vpop.f32.mrb[2].mxu0 }
 0x1c0   : > { %v2574_v33 = vadd.f32 %v1650_v31, %v745_v32  ;;  %v1731_v34 = vpop.f32.mrb[3].mxu0 }
 0x1c1   : > { %1272 = vrot.lane.b32.xlu1 %v581_v29, %s2181_s23 }
 0x1c2   : > { %1274 = vrot.lane.b32.xlu0 %v665_v25, %s2181_s23  ;;  %1738 = vmatpush3.msra.mxu1 %v2574_v33 }
 0x1c3   : > { %1747 = vmatprep.subr.mxu1 %v2178_v1 }
 0x22b   : > { %v936_v35 = vpop.permute.xlu0 %935  ;;  %v1106_v36 = vpop.permute.xlu1 %1105 }
 0x22c   : > { %1743 = vmatpush3.xpose.msk.msra.mxu0 %vm756_vm2, %v936_v35 }
 0x22d   : > { %1752 = vmatprep.subr.mxu0 %v2178_v1 }
 0x22f   : > { %v1104_v38 = vpop.permute.xlu1 %1103 }
 0x230   : > { %v934_v37 = vpop.permute.xlu0 %933 }
 0x231   : > { %1745 = vmatmul.mubr.msk.f32.vlgmr.msra.gmra.mrb[4].mxu0 %vm756_vm2, %v934_v37 }
 0x232   : > { %1753 = vmatpush3.xpose.msk.msra.mxu0 %vm756_vm2, %v1106_v36  ;;  %1754 = vmatprep.mubr.msk.f32.mxu0 %vm2177_vm0, %v2178_v1 }
 0x233   : > { %1762 = vmatprep.subr.mxu0 %v2178_v1  ;;  %v1273_v40 = vpop.permute.xlu1 %1272 }
 0x234   : > { %v1275_v39 = vpop.permute.xlu0 %1274 }
 0x235   : > { %1755 = vmatmul.mubr.msk.f32.vlgmr.msra.gmra.mrb[6].mxu0 %vm756_vm2, %v1104_v38 }
 0x236   : > { %1763 = vmatpush3.xpose.msk.msra.mxu0 %vm756_vm2, %v1275_v39  ;;  %1764 = vmatprep.mubr.msk.f32.mxu0 %vm2177_vm0, %v2178_v1 }
 0x239   : > { %1765 = vmatmul.mubr.msk.f32.vlgmr.msra.gmra.mrb[8].mxu0 %vm756_vm2, %v1273_v40 }
 0x290   : > { %v829_v48 = vpop.f32.mrb[2].mxu1 }
 0x291   : > { %v833_v49 = vmul.f32 0.35355338, %v829_v48  ;;  %v1736_v50 = vpop.f32.mrb[3].mxu1 }
 0x293   : > { %v841_v51 = vsel %vm840_vm4, -4.2949673e+09, %v833_v49 }
 0x294   : > { %v842_v52 = vsel %vm755_vm5, %v841_v51, -4.2949673e+09 }
 0x295   : > { %v843_v53 = vsel %vm756_vm2, %v842_v52, -inf }
 0x296   : > { %844 = vmax.xlane.f32.xlu0 %v843_v53 }
 0x304   : > { %v1007_v54 = vpop.f32.mrb[4].mxu0 }
 0x305   : > { %v1011_v55 = vmul.f32 0.35355338, %v1007_v54  ;;  %v1746_v56 = vpop.f32.mrb[5].mxu0 }
 0x307   : > { %v1012_v57 = vsel %vm840_vm4, -4.2949673e+09, %v1011_v55 }
 0x308   : > { %v1177_v58 = vpop.f32.mrb[6].mxu0  ;;  %v1013_v59 = vsel %vm755_vm5, %v1012_v57, -4.2949673e+09 }
 0x309   : > { %v1181_v60 = vmul.f32 0.35355338, %v1177_v58  ;;  %v1756_v61 = vpop.f32.mrb[7].mxu0  ;;  %v1014_v62 = vsel %vm756_vm2, %v1013_v59, -inf }
 0x30a   : > { %1015 = vmax.xlane.f32.xlu1 %v1014_v62 }
 0x30b   : > { %v1182_v63 = vsel %vm840_vm4, -4.2949673e+09, %v1181_v60 }
 0x30c   : > { %v1346_v0 = vpop.f32.mrb[8].mxu0  ;;  %v1183_v2 = vsel %vm755_vm5, %v1182_v63, -4.2949673e+09 }
 0x30d   : > { %v1350_v3 = vmul.f32 0.35355338, %v1346_v0  ;;  %v1766_v4 = vpop.f32.mrb[9].mxu0  ;;  %v1184_v5 = vsel %vm756_vm2, %v1183_v2, -inf }
 0x30e   : > { %1185 = vmax.xlane.f32.xlu0 %v1184_v5 }
 0x30f   : > { %v1351_v6 = vsel %vm840_vm4, -4.2949673e+09, %v1350_v3 }
 0x310   : > { %v1352_v7 = vsel %vm755_vm5, %v1351_v6, -4.2949673e+09 }
 0x311   : > { %v1353_v8 = vsel %vm756_vm2, %v1352_v7, -inf }
 0x312   : > { %1354 = vmax.xlane.f32.xlu0 %v1353_v8 }
 0x31b   : > { %856 = vperm.xlu1 %1894, %v750_v9  }
 0x323   : > { %v845_v10 = vpop.xlane.xlu0 %844 }
 0x324   : > { %v846_v11 = vsub.f32 %v842_v52, %v845_v10 }
 0x326   : > { %v847_v12 = vmul.f32 1.442695, %v846_v11 }
 0x328   : > { %1896 = vpow2.f32 %v847_v12 }
 0x332   : > { %v1897_v13 = vpop.eup %1896 }
 0x333   : > { %v849_v14 = vsel %vm756_vm2, %v1897_v13, 0.0 }
 0x33f   : > { %850 = vadd.xlane.f32.xlu1 %v849_v14 }
 0x397   : > { %v1016_v16 = vpop.xlane.xlu1 %1015 }
 0x398   : > { %v1017_v17 = vsub.f32 %v1013_v59, %v1016_v16 }
 0x39a   : > { %v1018_v18 = vmul.f32 1.442695, %v1017_v17 }
 0x39b   : > { %v1186_v19 = vpop.xlane.xlu0 %1185  ;;  %v857_v31 = vpop.permute.xlu1 %856 }
 0x39c   : > { %1898 = vpow2.f32 %v1018_v18  ;;  %v1187_v20 = vsub.f32 %v1183_v2, %v1186_v19 }
 0x39e   : > { %v1188_v21 = vmul.f32 1.442695, %v1187_v20 }
 0x39f   : > { %v1355_v22 = vpop.xlane.xlu0 %1354 }
 0x3a0   : > { %1900 = vpow2.f32 %v1188_v21  ;;  %v1356_v23 = vsub.f32 %v1352_v7, %v1355_v22 }
 0x3a2   : > { %v1357_v24 = vmul.f32 1.442695, %v1356_v23 }
 0x3a4   : > { %1902 = vpow2.f32 %v1357_v24 }
 0x3a6   : > { %v1899_v25 = vpop.eup %1898 }
 0x3a7   : > { %v1020_v26 = vsel %vm756_vm2, %v1899_v25, 0.0 }
 0x3a8   : > { %1021 = vadd.xlane.f32.xlu0 %v1020_v26 }
 0x3aa   : > { %v1901_v27 = vpop.eup %1900 }
 0x3ab   : > { %v1190_v28 = vsel %vm756_vm2, %v1901_v27, 0.0 }
 0x3ac   : > { %1191 = vadd.xlane.f32.xlu1 %v1190_v28 }
 0x3ae   : > { %v1903_v29 = vpop.eup %1902 }
 0x3af   : > { %v1359_v30 = vsel %vm756_vm2, %v1903_v29, 0.0 }
 0x3b0   : > { %1360 = vadd.xlane.f32.xlu0 %v1359_v30 }
 0x3bd   : > { %1196 = vrot.lane.b32.xlu1 %v2574_v33, %s2179_s18  ;;  %s2185_s18 = smov 24  }
 0x3c1   : > { %1365 = vrot.lane.b32.xlu1 %v2574_v33, %s2181_s23  ;;  %s489_s23 = scalar_lea.vmem [#allocation13], %s2500_s5 }
 0x3c2   : > { %s1474_s10 = sshll.u32 %s489_s23, 4  ;;  %s2645_s10 = int_to_ptr.vmem [resolvable:$true] %s1474_s10 }
 0x3c3   : > { %s2084_s5 = scalar_lea.vmem %s2645_s10, 128  ;;  %p2091_p7 = scmp.lt.s32.totalorder %s2645_s10, %s2089_s6 }
 0x3c4   : > { %p2085_p2 = scmp.ne.s32.totalorder %s2645_s10, %s2084_s5  ;;  %p2092_p8 = scmp.lt.s32.totalorder %s2090_s17, %s2084_s5 }
 0x3c6   : > { %1027 = vrot.lane.b32.xlu0 %v2574_v33, %s2180_s9  ;;  %s1665_s9 = sshll.u32 %s2263_s19, 7  ;;  %s1461_s19 = scalar_lea.sflag [#allocation4], %s2497_s25 }
 0x3c7   : > { %s2643_s27 = scalar_lea.hbm %s2733_s28, %s1665_s9  ;;  %p2086_p10 = pnand %p2085_p2, %p2734_p4 }
 0x3c8   : > { %p2093_p6 = por %p2092_p8, %p2091_p7 }
 0x3c9   : > { %p2087_p5 = pneg %p2086_p10 }
 0x3cb   : > { %p2094_p11 = pnand %p2093_p6, %p2087_p5 }
 0x3cc   : > { %v851_v32 = vpop.xlane.xlu1 %850 }
 0x3cd   : > { %1904 = vrcp.f32 %v851_v32 }
 0x3d7   : > { %v1905_v34 = vpop.eup %1904 }
 0x3d8   : > { %v853_v35 = vmul.f32 %v1905_v34, %v1897_v13 }
 0x3da   : > { %v859_v36 = vmul.f32 %v857_v31, %v853_v35 }
 0x3dc   : > { %1740 = vmatmul.mubr.msk.f32.vlgmr.msra.gmra.mrb[4].mxu1 %vm756_vm2, %v859_v36 }
 0x3dd   : > { %1749 = vmatprep.mubr.msk.f32.mxu1 %vm2177_vm0, %v2178_v1 }
 0x435   : > { %v1022_v37 = vpop.xlane.xlu0 %1021 }
 0x436   : > { %1906 = vrcp.f32 %v1022_v37 }
 0x439   : > { %v1192_v38 = vpop.xlane.xlu1 %1191 }
 0x43a   : > { %1908 = vrcp.f32 %v1192_v38 }
 0x43d   : > { %v1361_v39 = vpop.xlane.xlu0 %1360  ;;  %v1197_v42 = vpop.permute.xlu1 %1196 }
 0x43e   : > { %1910 = vrcp.f32 %v1361_v39 }
 0x440   : > { %v1907_v40 = vpop.eup %1906 }
 0x441   : > { %v1024_v41 = vmul.f32 %v1907_v40, %v1899_v25  ;;  %v1028_v33 = vpop.permute.xlu0 %1027  ;;  %v1366_v49 = vpop.permute.xlu1 %1365 }
 0x442   : > { %1748 = vmatpush3.msra.mxu1 %v1028_v33 }
 0x443   : > { %1757 = vmatprep.subr.mxu1 %v2178_v1  ;;  %v1025_v43 = vmul.f32 %v1024_v41, %v857_v31 }
 0x444   : > { %v1909_v44 = vpop.eup %1908 }
 0x445   : > { %v1194_v45 = vmul.f32 %v1909_v44, %v1901_v27  ;;  %1750 = vmatmul.mubr.msk.f32.vlgmr.msra.gmra.mrb[6].mxu1 %vm756_vm2, %v1025_v43 }
 0x446   : > { %1758 = vmatpush3.msra.mxu1 %v1197_v42  ;;  %1759 = vmatprep.mubr.msk.f32.mxu1 %vm2177_vm0, %v2178_v1 }
 0x447   : > { %1767 = vmatprep.subr.mxu1 %v2178_v1  ;;  %v1195_v46 = vmul.f32 %v1194_v45, %v857_v31 }
 0x448   : > { %v1911_v47 = vpop.eup %1910 }
 0x449   : > { %v1363_v48 = vmul.f32 %v1911_v47, %v1903_v29  ;;  %1760 = vmatmul.mubr.msk.f32.vlgmr.msra.gmra.mrb[8].mxu1 %vm756_vm2, %v1195_v46 }
 0x44a   : > { %1768 = vmatpush3.msra.mxu1 %v1366_v49  ;;  %1769 = vmatprep.mubr.msk.f32.mxu1 %vm2177_vm0, %v2178_v1 }
 0x44b   : > { %v1364_v50 = vmul.f32 %v1363_v48, %v857_v31 }
 0x44d   : > { %1770 = vmatmul.mubr.msk.f32.vlgmr.msra.gmra.mrb[10].mxu1 %vm756_vm2, %v1364_v50 }
 0x4af   : > { %v929_v51 = vpop.f32.mrb[4].mxu1 }
 0x4b0   : > { %v1741_v52 = vpop.f32.mrb[5].mxu1 }
 0x518   : > { %v1099_v53 = vpop.f32.mrb[6].mxu1 }
 0x519   : > { %1442 = vrot.lane.b32.xlu0 %v1099_v53, %s2183_s12  ;;  %v1751_v54 = vpop.f32.mrb[7].mxu1 }
 0x51c   : > { %v1268_v55 = vpop.f32.mrb[8].mxu1 }
 0x51d   : > { %1446 = vrot.lane.b32.xlu1 %v1268_v55, %s2184_s3  ;;  %v1761_v56 = vpop.f32.mrb[9].mxu1 }
 0x520   : > { %v1437_v57 = vpop.f32.mrb[10].mxu1 }
 0x521   : > { %1450 = vrot.lane.b32.xlu0 %v1437_v57, %s2185_s18  ;;  %v1771_v58 = vpop.f32.mrb[11].mxu1 }
 0x58b   : > { %v1443_v1 = vpop.permute.xlu0 %1442 }
 0x58c   : > { %v1453_v60 = vsel %vm756_vm2, %v929_v51, %v1443_v1 }
 0x58f   : > { %v1447_v59 = vpop.permute.xlu1 %1446 }
 0x590   : > { %v1455_v61 = vsel %vm1454_vm6, %v1453_v60, %v1447_v59 }
 0x593   : > { %v1451_v62 = vpop.permute.xlu0 %1450 }
 0x594   : > { %v1457_v63 = vsel %vm1456_vm7, %v1455_v61, %v1451_v62 }
 0x595   : > { %v1458_v0 = vadd.f32 %v1457_v63, %v2546_v15 }
 0x597   : > { %1459 = vst.msk [vmem:[%s489_s23] sm:$0xff] %vm510_vm1, %v1458_v0 }
 0x598   : > { %2097 = shalt.err (!%p2094_p11)
}
 0x599   : > { %s2098_s25 = scalar_lea.hbm %s2643_s27, 128  ;;  %s2102_s30 = scalar_lea.hbm %s2733_s28, 256 }
 0x59a   : > { %p2099_p1 = scmp.ne.s32.totalorder %s2643_s27, %s2098_s25  ;;  %p2103_p3 = scmp.lt.u32.totalorder %s2643_s27, %s2733_s28 }
 0x59b   : > { %p2104_p13 = scmp.lt.u32.totalorder %s2102_s30, %s2098_s25  ;;  %p2106_p2 = scmp.lt.u32.totalorder %s2098_s25, %s2643_s27 }
 0x59c   : > { %p2100_p9 = pnand %p2099_p1, %p2734_p4 }
 0x59d   : > { %p2105_p0 = por %p2104_p13, %p2103_p3 }
 0x59e   : > { %p2101_p12 = pneg %p2100_p9 }
 0x59f   : > { %p2107_p10 = por %p2106_p2, %p2105_p0 }
 0x5a1   : > { %p2108_p5 = pnand %p2107_p10, %p2101_p12 }
 0x5a3   : > { %2111 = shalt.err (!%p2108_p5)
}
 0x5a4   : > { %1810 = dma.vmem_to_hbm [thread:$0]  (%p2734_p4), %s2645_s10, 128, %s2643_s27, %s1461_s19  }
 0x5a5 PF: > { %s1486_s18 = sand.u32 1, %s2154_s13   ;;  %p2735_p7 = scmp.ne.s32.totalorder %s2722_s21, 0 }
 0x5a6   : > { %p2736_p8 = scmp.ge.s32.totalorder %s2166_s16, 2  ;;  %s1487_s9 = scalar_lea.sflag [#allocation4], %s1486_s18 }
 0x5a8   : > { %p1833_p6 = pnand %p2736_p8, %p2735_p7 }
 0x5aa   : > { %2149 = dma.done.wait (!%p1833_p6), %s1487_s9, 128  }
 0x5ab   : > { %2151 = vsyncadd (!%p1833_p6), %s1487_s9, 4294967168  ;;  %s2737_s23 = sld [smem:[#allocation20_spill]]  ;;  %p28_p11 = scmp.ge.s32.totalorder %s2390_s11, 4  }
 0x5ac   : > { %s2738_s13 = smov %s2158_s14  ;;  %s2739_s14 = smov %s2162_s15 }
 0x5ad   : > { %s2741_s16 = smov %s2390_s11  ;;  %30 = sbr.rel (!%p28_p11) target bundleno = 16 (0x10), region = 140 }
 0x5b1   : > { %s2740_s15 = smov %s2737_s23 }
 0x5b4   :  { %1492 = vsyncpa [#allocation3], 1 }
 0x5b5   :  { %1494 = vsyncpa [#allocation3 + $0x1], 1 }
 0x5b6   :  { %1495 = vsyncpa [#allocation6], 1 }
 0x5b7   :  { %1497 = vsyncpa [#allocation6 + $0x1], 1 }
 0x5b8   :  { %1498 = vsyncpa [#allocation9], 1 }
 0x5b9   :  { %1499 = vsyncpa [#allocation12], 1 }
 0x5ba   :  { %1500 = vsyncpa [#allocation4], 1 }
 0x5bb   :  { %1502 = vsyncpa [#allocation4 + $0x1], 1 }

</bundles_post_ra>
